<compile_context>
chip_gen: v6e
topology: v6e:2x2x1
jax: 0.10.0
libtpu: 0.0.40
codegen_flags: <defaults>
</compile_context>

<pallas_src>
import math

import jax
import jax.numpy as jnp
from jax.experimental import pallas as pl
from jax.experimental.pallas import tpu as pltpu

_LANES = 128


def _round_up(n, m):
    return ((n + m - 1) // m) * m


def _sublane_multiple(dtype):
    # minimum second-minor block multiple per element width: f32->8, bf16->16, int8/fp8->32
    return {4: 8, 2: 16, 1: 32}.get(jnp.dtype(dtype).itemsize, 8)


class Dummy:
    """Matches the PyTorch wrapper: .mean is the encoder output, .stddev is all-ones.

    stddev is built lazily so the all-ones tensor never hits HBM unless used."""

    def __init__(self, mean):
        self.mean = mean

    @property
    def stddev(self):
        return jnp.ones_like(self.mean)


# ----------------------------------------------------------------------------- kernel


def _traj_encoder_kernel(x_ref, w1p_ref, b1_ref, w2r_ref, b2_ref, out_ref):
    """One batch tile of the fused forward pass."""
    dp = b1_ref.shape[-1]                       # lane-padded hidden width (multiple of 128)
    x = x_ref[...].astype(w1p_ref.dtype)        # in-kernel cast (VPU), x streams in native dtype

    # Stage 1: one fused MXU matmul for linear1 and the bias-free projection:
    #   z = x @ [W1 | Wp]  -> [tb, 2*dp], f32 accumulate; split at dp is vreg-aligned.
    z = jnp.dot(x, w1p_ref[...], preferred_element_type=jnp.float32)
    h = z[:, :dp] + b1_ref[...]                 # linear1 pre-activation (f32)
    h = jnp.maximum(h, 0.25 * h)                # leaky_relu, negative_slope = 0.25
    x1 = h + z[:, dp:]                          # + projection(identity1); padded cols stay 0

    # Stage 2: linear2 with the residual folded into the weight (W2' = W2 + I),
    # kept in f32 so the skip connection is exact.  Output columns are unpadded.
    y = jnp.dot(x1, w2r_ref[...], preferred_element_type=jnp.float32) + b2_ref[...]
    out_ref[...] = y.astype(out_ref.dtype)


# ----------------------------------------------------------------------------- host-side prep


def prepare_params(params, compute_dtype=jnp.bfloat16):
    """One-time host-side prep: fuse [W1|Wp], fold residual into W2, lane-pad.

    compute_dtype applies only to the fused first-stage weight (and the in-kernel
    x cast).  W2+I and both biases stay f32 so the residual / elementwise path is
    exact on every generation (v5e has no bf16 VPU anyway)."""
    w1 = jnp.asarray(params["w1"], jnp.float32)
    wp = jnp.asarray(params["wp"], jnp.float32)
    w2 = jnp.asarray(params["w2"], jnp.float32)
    b1 = jnp.asarray(params["b1"], jnp.float32)
    b2 = jnp.asarray(params["b2"], jnp.float32)

    d_in, d_out = w1.shape
    dp = _round_up(d_out, _LANES)
    pad = dp - d_out

    # Fused first-stage weight: [d_in, 2*dp] = [W1 (lane-padded) | Wp (lane-padded)]
    w1p = jnp.concatenate(
        [jnp.pad(w1, ((0, 0), (0, pad))), jnp.pad(wp, ((0, 0), (0, pad)))], axis=1
    ).astype(compute_dtype)

    # Second-stage weight with the residual folded in and rows padded to dp.
    # Padded rows multiply the (identically zero) padded columns of x1, so this is exact.
    w2r = jnp.pad(w2, ((0, pad), (0, 0))) + jnp.eye(dp, d_out, dtype=jnp.float32)

    return {
        "w1p": w1p,                              # [d_in, 2*dp], compute_dtype
        "w2r": w2r,                              # [dp, d_out], f32 (exact residual)
        "b1": jnp.pad(b1, (0, pad)).reshape(1, dp),   # [1, dp], f32
        "b2": b2.reshape(1, d_out),              # [1, d_out], f32
        "d_in": int(d_in),
        "d_out": int(d_out),
        "dp": int(dp),
    }


# ----------------------------------------------------------------------------- tiling / launch


def _choose_tile_b(batch, d_in, dp, d_out, x_dtype, out_dtype, resident_bytes,
                   max_tile_b=2048, vmem_budget_bytes=20 * 1024 * 1024,
                   target_grid_steps=2):
    """Pick the batch-tile: as large as the VMEM budget allows (HBM efficiency),
    but with >= target_grid_steps grid steps so both v7x TensorCores get rows."""
    sub = max(_sublane_multiple(x_dtype), _sublane_multiple(out_dtype))
    if batch <= sub:
        return int(batch)                        # block == full array dim: always legal

    x_row = _round_up(d_in, _LANES) * jnp.dtype(x_dtype).itemsize
    out_row = _round_up(d_out, _LANES) * jnp.dtype(out_dtype).itemsize
    scratch_row = (3 * dp + _round_up(d_out, _LANES)) * 4   # z, x1, y f32 intermediates
    row_bytes = 2 * (x_row + out_row) + scratch_row          # double-buffered x/out tiles

    rows_cap = max((vmem_budget_bytes - 2 * resident_bytes) // row_bytes, sub)
    tb = min(max_tile_b, rows_cap)
    tb = min(tb, _round_up(pl.cdiv(batch, target_grid_steps), sub))
    tb = max((tb // sub) * sub, sub)
    return int(tb)


def _launch(x2, prepared, tb, out_dtype, single_buffer_weights):
    w1p, w2r = prepared["w1p"], prepared["w2r"]
    b1, b2 = prepared["b1"], prepared["b2"]
    d_in, d_out, dp = prepared["d_in"], prepared["d_out"], prepared["dp"]
    batch = x2.shape[0]

    # Grid-invariant (VMEM-resident) blocks: request single buffering when supported.
    res_kw = {"pipeline_mode": pl.Buffered(1)} if single_buffer_weights else {}
    in_specs = [
        pl.BlockSpec((tb, d_in), lambda i: (i, 0)),                 # x tile, streamed
        pl.BlockSpec((d_in, 2 * dp), lambda i: (0, 0), **res_kw),   # [W1|Wp], resident
        pl.BlockSpec((1, dp), lambda i: (0, 0), **res_kw),          # b1, resident
        pl.BlockSpec((dp, d_out), lambda i: (0, 0), **res_kw),      # W2 + I, resident (f32)
        pl.BlockSpec((1, d_out), lambda i: (0, 0), **res_kw),       # b2, resident
    ]
    out_spec = pl.BlockSpec((tb, d_out), lambda i: (i, 0))          # unpadded output tile

    return pl.pallas_call(
        _traj_encoder_kernel,
        out_shape=jax.ShapeDtypeStruct((batch, d_out), out_dtype),
        grid=(pl.cdiv(batch, tb),),                                 # masked last tile, no padding
        in_specs=in_specs,
        out_specs=out_spec,
        compiler_params=pltpu.CompilerParams(
            dimension_semantics=("parallel",),                      # megacore / 2-TC shard
            # 32 MiB is within the scoped ceiling on v5e/v6e/v7x; tiles are sized
            # against a 20 MiB budget so there is headroom on every generation.
            vmem_limit_bytes=32 * 1024 * 1024,
        ),
    )(x2, w1p, b1, w2r, b2)


def traj_encoder_forward(x, prepared, *, max_tile_b=2048):
    """Returns Dummy(mean) matching the PyTorch module.  Any leading dims of x
    (e.g. [T, B, d_in]) are folded into one batch/grid dimension."""
    d_in, d_out, dp = prepared["d_in"], prepared["d_out"], prepared["dp"]

    unsqueezed = x.ndim == 1
    if unsqueezed:
        x = x[None, :]
    lead_shape = x.shape[:-1]

    x2 = x.reshape(-1, d_in)           # row-major reshape: a view, no copy / cast / pad
    batch = x2.shape[0]
    out_dtype = x2.dtype

    resident_bytes = sum(
        int(prepared[k].size) * prepared[k].dtype.itemsize
        for k in ("w1p", "w2r", "b1", "b2")
    )
    tb = _choose_tile_b(batch, d_in, dp, d_out, x2.dtype, out_dtype,
                        resident_bytes, max_tile_b=max_tile_b)

    try:
        out = _launch(x2, prepared, tb, out_dtype, single_buffer_weights=True)
    except Exception:
        # pipeline_mode=pl.Buffered(1) not supported on this JAX version: use defaults.
        out = _launch(x2, prepared, tb, out_dtype, single_buffer_weights=False)

    mean = out.reshape(lead_shape + (d_out,))
    if unsqueezed:
        mean = mean[0]
    return Dummy(mean)


# ----------------------------------------------------------------------------- init / reference


def init_params(key, traj_encoder_obs_dim, output_dim):
    """Deterministic init mimicking PyTorch nn.Linear defaults (uniform +-1/sqrt(fan_in)).
    Weights are stored as [in, out] (transposed vs. torch's [out, in])."""
    k1, k2, k3, k4, k5 = jax.random.split(key, 5)
    bound1 = 1.0 / math.sqrt(traj_encoder_obs_dim)
    bound2 = 1.0 / math.sqrt(output_dim)
    return {
        "w1": jax.random.uniform(k1, (traj_encoder_obs_dim, output_dim), jnp.float32, -bound1, bound1),
        "b1": jax.random.uniform(k2, (output_dim,), jnp.float32, -bound1, bound1),
        "wp": jax.random.uniform(k3, (traj_encoder_obs_dim, output_dim), jnp.float32, -bound1, bound1),
        "w2": jax.random.uniform(k4, (output_dim, output_dim), jnp.float32, -bound2, bound2),
        "b2": jax.random.uniform(k5, (output_dim,), jnp.float32, -bound2, bound2),
    }


def _reference_forward(x, params):
    h = x @ params["w1"] + params["b1"]
    h = jnp.where(h >= 0.0, h, 0.25 * h)
    x1 = h + x @ params["wp"]
    y = x1 @ params["w2"] + params["b2"]
    return y + x1


# ----------------------------------------------------------------------------- demo / checks


if __name__ == "__main__":
    key = jax.random.PRNGKey(0)
    kx, kp, kx2 = jax.random.split(key, 3)

    traj_encoder_obs_dim = 16
    output_dim = 32

    raw_params = init_params(kp, traj_encoder_obs_dim, output_dim)
    prep_f32 = prepare_params(raw_params, compute_dtype=jnp.float32)   # exact path
    prep_bf16 = prepare_params(raw_params)                             # default bf16 x/W1|Wp

    # small batch, single grid step, exact f32 path
    x = jax.random.normal(kx, (8, traj_encoder_obs_dim), jnp.float32)
    d = traj_encoder_forward(x, prep_f32)
    mean = jax.block_until_ready(d.mean)
    ref = _reference_forward(x, raw_params)
    assert mean.shape == (8, output_dim)
    assert jnp.allclose(mean, ref, atol=1e-4, rtol=1e-4)
    assert d.stddev.shape == (8, output_dim) and bool(jnp.all(d.stddev == 1.0))

    # larger batch: 2-step "parallel" grid with a masked (non-divisible) last tile, exact f32
    xb = jax.random.normal(kx2, (300, traj_encoder_obs_dim), jnp.float32)
    ref_b = _reference_forward(xb, raw_params)
    mean_b = jax.block_until_ready(traj_encoder_forward(xb, prep_f32).mean)
    assert mean_b.shape == (300, output_dim)
    assert jnp.allclose(mean_b, ref_b, atol=1e-4, rtol=1e-4)

    # same batch through the bf16-weights/x path (default); residual + biases stay f32
    mean_bf = jax.block_until_ready(traj_encoder_forward(xb, prep_bf16).mean)
    assert mean_bf.shape == (300, output_dim)
    assert jnp.allclose(mean_bf, ref_b, atol=5e-2, rtol=5e-2)

    # 1-D (unsqueezed) input path from the PyTorch module
    d1 = traj_encoder_forward(x[0], prep_f32)
    mean1d = jax.block_until_ready(d1.mean)
    assert mean1d.shape == (output_dim,)
    assert d1.stddev.shape == (output_dim,)
    assert jnp.allclose(mean1d, ref[0], atol=1e-4, rtol=1e-4)

    print("KERNEL_OK")
</pallas_src>

<mosaic_0001>
module attributes {stable_mosaic.version = 11 : i64} {
  func.func @_traj_encoder_kernel(%arg0: i32, %arg1: memref<8x16xf32, #tpu.memory_space<vmem>>, %arg2: memref<16x256xf32, #tpu.memory_space<vmem>>, %arg3: memref<1x128xf32, #tpu.memory_space<vmem>>, %arg4: memref<128x32xf32, #tpu.memory_space<vmem>>, %arg5: memref<1x32xf32, #tpu.memory_space<vmem>>, %arg6: memref<8x32xf32, #tpu.memory_space<vmem>>) attributes {dimension_semantics = [#tpu.dimension_semantics<parallel>], iteration_bounds = array<i64: 1>, scalar_prefetch = 0 : i64, scratch_operands = 0 : i64, tpu.core_type = #tpu.core_type<tc>, window_params = [{transform_indices = @transform_0, window_bounds = array<i64: 8, 16>}, {pipeline_mode = #tpu.pipeline_mode<synchronous>, transform_indices = @transform_1, window_bounds = array<i64: 16, 256>}, {pipeline_mode = #tpu.pipeline_mode<synchronous>, transform_indices = @transform_2, window_bounds = array<i64: 1, 128>}, {pipeline_mode = #tpu.pipeline_mode<synchronous>, transform_indices = @transform_3, window_bounds = array<i64: 128, 32>}, {pipeline_mode = #tpu.pipeline_mode<synchronous>, transform_indices = @transform_4, window_bounds = array<i64: 1, 32>}, {transform_indices = @transform_5, window_bounds = array<i64: 8, 32>}]} {
    %c0 = arith.constant 0 : index
    %c0_0 = arith.constant 0 : index
    %0 = vector.load %arg1[%c0, %c0_0] : memref<8x16xf32, #tpu.memory_space<vmem>>, vector<8x16xf32>
    %c0_1 = arith.constant 0 : index
    %c0_2 = arith.constant 0 : index
    %1 = vector.load %arg2[%c0_1, %c0_2] : memref<16x256xf32, #tpu.memory_space<vmem>>, vector<16x256xf32>
    %cst = arith.constant dense<0.000000e+00> : vector<8x256xf32>
    %2 = tpu.matmul %0, %1, %cst {dimension_numbers = #tpu.dot_dimension_numbers<[1], [0], [0], [1], [0, 0, 1, 1], [], []>} : vector<8x16xf32>, vector<16x256xf32>, vector<8x256xf32> -> vector<8x256xf32>
    %3 = vector.extract_strided_slice %2 {offsets = [0, 0], sizes = [8, 128], strides = [1, 1]} : vector<8x256xf32> to vector<8x128xf32>
    %c0_3 = arith.constant 0 : index
    %c0_4 = arith.constant 0 : index
    %4 = vector.load %arg3[%c0_3, %c0_4] : memref<1x128xf32, #tpu.memory_space<vmem>>, vector<1x128xf32>
    %5 = vector.broadcast %4 : vector<1x128xf32> to vector<8x128xf32>
    %6 = arith.addf %3, %5 : vector<8x128xf32>
    %cst_5 = arith.constant 2.500000e-01 : f32
    %7 = vector.broadcast %cst_5 : f32 to vector<8x128xf32>
    %8 = arith.mulf %7, %6 : vector<8x128xf32>
    %9 = arith.maximumf %6, %8 : vector<8x128xf32>
    %10 = vector.extract_strided_slice %2 {offsets = [0, 128], sizes = [8, 128], strides = [1, 1]} : vector<8x256xf32> to vector<8x128xf32>
    %11 = arith.addf %9, %10 : vector<8x128xf32>
    %c0_6 = arith.constant 0 : index
    %c0_7 = arith.constant 0 : index
    %12 = vector.load %arg4[%c0_6, %c0_7] : memref<128x32xf32, #tpu.memory_space<vmem>>, vector<128x32xf32>
    %cst_8 = arith.constant dense<0.000000e+00> : vector<8x32xf32>
    %13 = tpu.matmul %11, %12, %cst_8 {dimension_numbers = #tpu.dot_dimension_numbers<[1], [0], [0], [1], [0, 0, 1, 1], [], []>} : vector<8x128xf32>, vector<128x32xf32>, vector<8x32xf32> -> vector<8x32xf32>
    %c0_9 = arith.constant 0 : index
    %c0_10 = arith.constant 0 : index
    %14 = vector.load %arg5[%c0_9, %c0_10] : memref<1x32xf32, #tpu.memory_space<vmem>>, vector<1x32xf32>
    %15 = vector.broadcast %14 : vector<1x32xf32> to vector<8x32xf32>
    %16 = arith.addf %13, %15 : vector<8x32xf32>
    %c0_11 = arith.constant 0 : index
    %c0_12 = arith.constant 0 : index
    %17 = vector.load %arg6[%c0_11, %c0_12] : memref<8x32xf32, #tpu.memory_space<vmem>>, vector<8x32xf32>
    tpu.vector_store %arg6[%c0_11, %c0_12], %16 {strides = array<i32>} : memref<8x32xf32, #tpu.memory_space<vmem>>, vector<8x32xf32>,
    return
  }
  func.func @transform_0(%arg0: i32) -> (i32, i32) {
    %c0_i32 = arith.constant 0 : i32
    %c0_i32_0 = arith.constant 0 : i32
    return %arg0, %c0_i32 : i32, i32
  }
  func.func @transform_1(%arg0: i32) -> (i32, i32) {
    %c0_i32 = arith.constant 0 : i32
    %c0_i32_0 = arith.constant 0 : i32
    %c0_i32_1 = arith.constant 0 : i32
    return %c0_i32, %c0_i32_0 : i32, i32
  }
  func.func @transform_2(%arg0: i32) -> (i32, i32) {
    %c0_i32 = arith.constant 0 : i32
    %c0_i32_0 = arith.constant 0 : i32
    %c0_i32_1 = arith.constant 0 : i32
    return %c0_i32, %c0_i32_0 : i32, i32
  }
  func.func @transform_3(%arg0: i32) -> (i32, i32) {
    %c0_i32 = arith.constant 0 : i32
    %c0_i32_0 = arith.constant 0 : i32
    %c0_i32_1 = arith.constant 0 : i32
    return %c0_i32, %c0_i32_0 : i32, i32
  }
  func.func @transform_4(%arg0: i32) -> (i32, i32) {
    %c0_i32 = arith.constant 0 : i32
    %c0_i32_0 = arith.constant 0 : i32
    %c0_i32_1 = arith.constant 0 : i32
    return %c0_i32, %c0_i32_0 : i32, i32
  }
  func.func @transform_5(%arg0: i32) -> (i32, i32) {
    %c0_i32 = arith.constant 0 : i32
    %c0_i32_0 = arith.constant 0 : i32
    return %arg0, %c0_i32 : i32, i32
  }
}

module attributes {stable_mosaic.version = 11 : i64} {
  func.func @_traj_encoder_kernel(%arg0: i32, %arg1: memref<8x16xf32, #tpu.memory_space<vmem>>, %arg2: memref<16x256xf32, #tpu.memory_space<vmem>>, %arg3: memref<1x128xf32, #tpu.memory_space<vmem>>, %arg4: memref<128x32xf32, #tpu.memory_space<vmem>>, %arg5: memref<1x32xf32, #tpu.memory_space<vmem>>, %arg6: memref<8x32xf32, #tpu.memory_space<vmem>>) attributes {dimension_semantics = [#tpu.dimension_semantics<parallel>], iteration_bounds = array<i64: 1>, scalar_prefetch = 0 : i64, scratch_operands = 0 : i64, tpu.core_type = #tpu.core_type<tc>, window_params = [{transform_indices = @transform_0, window_bounds = array<i64: 8, 16>}, {pipeline_mode = #tpu.pipeline_mode<synchronous>, transform_indices = @transform_1, window_bounds = array<i64: 16, 256>}, {pipeline_mode = #tpu.pipeline_mode<synchronous>, transform_indices = @transform_2, window_bounds = array<i64: 1, 128>}, {pipeline_mode = #tpu.pipeline_mode<synchronous>, transform_indices = @transform_3, window_bounds = array<i64: 128, 32>}, {pipeline_mode = #tpu.pipeline_mode<synchronous>, transform_indices = @transform_4, window_bounds = array<i64: 1, 32>}, {transform_indices = @transform_5, window_bounds = array<i64: 8, 32>}]} {
    %c0 = arith.constant 0 : index
    %c0_0 = arith.constant 0 : index
    %0 = vector.load %arg1[%c0, %c0_0] : memref<8x16xf32, #tpu.memory_space<vmem>>, vector<8x16xf32>
    %c0_1 = arith.constant 0 : index
    %c0_2 = arith.constant 0 : index
    %1 = vector.load %arg2[%c0_1, %c0_2] : memref<16x256xf32, #tpu.memory_space<vmem>>, vector<16x256xf32>
    %cst = arith.constant dense<0.000000e+00> : vector<8x256xf32>
    %2 = tpu.matmul %0, %1, %cst {dimension_numbers = #tpu.dot_dimension_numbers<[1], [0], [0], [1], [0, 0, 1, 1], [], []>} : vector<8x16xf32>, vector<16x256xf32>, vector<8x256xf32> -> vector<8x256xf32>
    %3 = vector.extract_strided_slice %2 {offsets = [0, 0], sizes = [8, 128], strides = [1, 1]} : vector<8x256xf32> to vector<8x128xf32>
    %c0_3 = arith.constant 0 : index
    %c0_4 = arith.constant 0 : index
    %4 = vector.load %arg3[%c0_3, %c0_4] : memref<1x128xf32, #tpu.memory_space<vmem>>, vector<1x128xf32>
    %5 = vector.broadcast %4 : vector<1x128xf32> to vector<8x128xf32>
    %6 = arith.addf %3, %5 : vector<8x128xf32>
    %cst_5 = arith.constant 2.500000e-01 : f32
    %7 = vector.broadcast %cst_5 : f32 to vector<8x128xf32>
    %8 = arith.mulf %7, %6 : vector<8x128xf32>
    %9 = arith.maximumf %6, %8 : vector<8x128xf32>
    %10 = vector.extract_strided_slice %2 {offsets = [0, 128], sizes = [8, 128], strides = [1, 1]} : vector<8x256xf32> to vector<8x128xf32>
    %11 = arith.addf %9, %10 : vector<8x128xf32>
    %c0_6 = arith.constant 0 : index
    %c0_7 = arith.constant 0 : index
    %12 = vector.load %arg4[%c0_6, %c0_7] : memref<128x32xf32, #tpu.memory_space<vmem>>, vector<128x32xf32>
    %cst_8 = arith.constant dense<0.000000e+00> : vector<8x32xf32>
    %13 = tpu.matmul %11, %12, %cst_8 {dimension_numbers = #tpu.dot_dimension_numbers<[1], [0], [0], [1], [0, 0, 1, 1], [], []>} : vector<8x128xf32>, vector<128x32xf32>, vector<8x32xf32> -> vector<8x32xf32>
    %c0_9 = arith.constant 0 : index
    %c0_10 = arith.constant 0 : index
    %14 = vector.load %arg5[%c0_9, %c0_10] : memref<1x32xf32, #tpu.memory_space<vmem>>, vector<1x32xf32>
    %15 = vector.broadcast %14 : vector<1x32xf32> to vector<8x32xf32>
    %16 = arith.addf %13, %15 : vector<8x32xf32>
    %c0_11 = arith.constant 0 : index
    %c0_12 = arith.constant 0 : index
    %17 = vector.load %arg6[%c0_11, %c0_12] : memref<8x32xf32, #tpu.memory_space<vmem>>, vector<8x32xf32>
    tpu.vector_store %arg6[%c0_11, %c0_12], %16 {strides = array<i32>} : memref<8x32xf32, #tpu.memory_space<vmem>>, vector<8x32xf32>,
    return
  }
  func.func @transform_0(%arg0: i32) -> (i32, i32) {
    %c0_i32 = arith.constant 0 : i32
    %c0_i32_0 = arith.constant 0 : i32
    return %arg0, %c0_i32 : i32, i32
  }
  func.func @transform_1(%arg0: i32) -> (i32, i32) {
    %c0_i32 = arith.constant 0 : i32
    %c0_i32_0 = arith.constant 0 : i32
    %c0_i32_1 = arith.constant 0 : i32
    return %c0_i32, %c0_i32_0 : i32, i32
  }
  func.func @transform_2(%arg0: i32) -> (i32, i32) {
    %c0_i32 = arith.constant 0 : i32
    %c0_i32_0 = arith.constant 0 : i32
    %c0_i32_1 = arith.constant 0 : i32
    return %c0_i32, %c0_i32_0 : i32, i32
  }
  func.func @transform_3(%arg0: i32) -> (i32, i32) {
    %c0_i32 = arith.constant 0 : i32
    %c0_i32_0 = arith.constant 0 : i32
    %c0_i32_1 = arith.constant 0 : i32
    return %c0_i32, %c0_i32_0 : i32, i32
  }
  func.func @transform_4(%arg0: i32) -> (i32, i32) {
    %c0_i32 = arith.constant 0 : i32
    %c0_i32_0 = arith.constant 0 : i32
    %c0_i32_1 = arith.constant 0 : i32
    return %c0_i32, %c0_i32_0 : i32, i32
  }
  func.func @transform_5(%arg0: i32) -> (i32, i32) {
    %c0_i32 = arith.constant 0 : i32
    %c0_i32_0 = arith.constant 0 : i32
    return %arg0, %c0_i32 : i32, i32
  }
}

</mosaic_0001>

<bundles_post_ra>
// kernel: tpu_custom_call.1
= control target key start
LH: loop header
LB: loop body
LE: loop exit
PB: predicated region body
PF: predicated region fallthrough
CT: control target
= control target key end

     0   :  { %v301_v4 = vmov 0.0   ;;  %vm26_vm0 = vcmask 130048   ;;  %s406_s0 = inlined_call_operand.vmem [shape: f32[8,16], index: 0, kind: input, shape index: {}]   ;;  %s407_s1 = inlined_call_operand.vmem [shape: f32[16,256], index: 1, kind: input, shape index: {}]   ;;  %s408_s2 = inlined_call_operand.vmem [shape: f32[1,128], index: 2, kind: input, shape index: {}]   ;;  %s409_s3 = inlined_call_operand.vmem [shape: f32[128,32], index: 3, kind: input, shape index: {}]   ;;  %s410_s4 = inlined_call_operand.vmem [shape: f32[1,32], index: 4, kind: input, shape index: {}]   ;;  %s411_s5 = inlined_call_operand.hbm [shape: f32[8,32], index: 5, kind: output, shape index: {}]  }
   0x1   :  { %v25_v0 = vld [vmem:[%s407_s1 + $0x18] sm:$0xff]  ;;  %v24_v1 = vld [vmem:[%s407_s1 + $0x10] sm:$0xff]  ;;  %v23_v2 = vld [vmem:[%s407_s1 + $0x8] sm:$0xff]  ;;  %94 = vmatprep.mubr.f32.mxu0 %v301_v4  ;;  %241 = vmatprep.subr.mxu1 %v301_v4 }
   0x2   :  { %58 = vmatprep.subr.mxu0 %v25_v0  ;;  %v22_v3 = vld [vmem:[%s407_s1] sm:$0xff]  ;;  %v127_v5 = vld [vmem:[%s409_s3 + $0x78] sm:$0xff]  ;;  %v126_v7 = vld [vmem:[%s409_s3 + $0x70] sm:$0xff] }
   0x3   :  { %59 = vmatpush1.msra.mxu0 %v24_v1  ;;  %v21_v6 = vld [vmem:[%s406_s0] sm:$0xff]  ;;  %242 = vmatpush3.msra.mxu1 %v127_v5  ;;  %v125_v8 = vld [vmem:[%s409_s3 + $0x68] sm:$0xff] }
   0x4   :  { %60 = vmatprep.subr.mxu0 %v23_v2  ;;  %243 = vmatprep.subr.mxu1 %v301_v4 }
   0x5   :  { %61 = vmatpush1.msra.mxu0 %v22_v3  ;;  %244 = vmatpush3.msra.mxu1 %v126_v7 }
   0x6   :  { %221 = vmatmul.mubr.msk.f32.vlgmr.msra.gmra.mxu0 %vm26_vm0, %v21_v6 }
   0x7   :  { %10 = vsyncpa [#allocation3], 0  ;;  %245 = vmatprep.subr.mxu1 %v301_v4  ;;  %v124_v9 = vld [vmem:[%s409_s3 + $0x60] sm:$0xff]  ;;  %v123_v10 = vld [vmem:[%s409_s3 + $0x58] sm:$0xff]  ;;  %vm302_vm1 = vmmov 0   ;;  %s303_s10 = smov [#allocation2]  }
   0x8   :  { %246 = vmatpush3.msra.mxu1 %v125_v8  ;;  %v122_v11 = vld [vmem:[%s409_s3 + $0x50] sm:$0xff]  ;;  %v121_v12 = vld [vmem:[%s409_s3 + $0x48] sm:$0xff]  ;;  %v120_v13 = vld [vmem:[%s409_s3 + $0x40] sm:$0xff]  ;;  %273 = vmatprep.mubr.msk.f32.mxu1 %vm302_vm1, %v301_v4  ;;  %vm205_vm2 = vcmask 261120  }
   0x9   :  { %247 = vmatprep.subr.mxu1 %v301_v4  ;;  %v119_v14 = vld [vmem:[%s409_s3 + $0x38] sm:$0xff]  ;;  %v118_v15 = vld [vmem:[%s409_s3 + $0x30] sm:$0xff]  ;;  %v117_v16 = vld [vmem:[%s409_s3 + $0x28] sm:$0xff] }
   0xa   :  { %248 = vmatpush3.msra.mxu1 %v124_v9  ;;  %v116_v17 = vld [vmem:[%s409_s3 + $0x20] sm:$0xff]  ;;  %v115_v18 = vld [vmem:[%s409_s3 + $0x18] sm:$0xff]  ;;  %v114_v19 = vld [vmem:[%s409_s3 + $0x10] sm:$0xff] }
   0xb   :  { %249 = vmatprep.subr.mxu1 %v301_v4  ;;  %v113_v20 = vld [vmem:[%s409_s3 + $0x8] sm:$0xff]  ;;  %v112_v21 = vld [vmem:[%s409_s3] sm:$0xff]  ;;  %s213_s3 = sshll.u32 %s303_s10, 4  ;;  %s214_s3 = int_to_ptr.vmem [resolvable:$true] %s213_s3 }
   0xc   :  { %250 = vmatpush3.msra.mxu1 %v123_v10  ;;  %v222_v22 = vld [vmem:[%s408_s2] ss:$0 sm:$0xff]  ;;  %s279_s2 = scalar_lea.vmem %s214_s3, 128  ;;  %p284_p1 = scmp.lt.s32.totalorder %s214_s3, %s214_s3 }
   0xd   :  { %251 = vmatprep.subr.mxu1 %v301_v4  ;;  %v223_v29 = vld [vmem:[%s410_s4] ss:$0 sm:$0xff]  ;;  %p280_p0 = scmp.ne.s32.totalorder %s214_s3, %s279_s2  ;;  %p285_p2 = scmp.lt.s32.totalorder %s279_s2, %s279_s2 }
   0xe   :  { %252 = vmatpush3.msra.mxu1 %v122_v11 }
   0xf   :  { %253 = vmatprep.subr.mxu1 %v301_v4  ;;  %p286_p3 = por %p285_p2, %p284_p1 }
  0x10   :  { %254 = vmatpush3.msra.mxu1 %v121_v12 }
  0x11   :  { %255 = vmatprep.subr.mxu1 %v301_v4  ;;  %p287_p4 = pnand %p286_p3, %p280_p0 }
  0x12   :  { %256 = vmatpush3.msra.mxu1 %v120_v13 }
  0x13   :  { %257 = vmatprep.subr.mxu1 %v301_v4 }
  0x14   :  { %258 = vmatpush3.msra.mxu1 %v119_v14 }
  0x15   :  { %259 = vmatprep.subr.mxu1 %v301_v4 }
  0x16   :  { %260 = vmatpush3.msra.mxu1 %v118_v15 }
  0x17   :  { %261 = vmatprep.subr.mxu1 %v301_v4 }
  0x18   :  { %262 = vmatpush3.msra.mxu1 %v117_v16 }
  0x19   :  { %263 = vmatprep.subr.mxu1 %v301_v4 }
  0x1a   :  { %264 = vmatpush3.msra.mxu1 %v116_v17 }
  0x1b   :  { %265 = vmatprep.subr.mxu1 %v301_v4 }
  0x1c   :  { %266 = vmatpush3.msra.mxu1 %v115_v18 }
  0x1d   :  { %267 = vmatprep.subr.mxu1 %v301_v4 }
  0x1e   :  { %268 = vmatpush3.msra.mxu1 %v114_v19 }
  0x1f   :  { %269 = vmatprep.subr.mxu1 %v301_v4 }
  0x20   :  { %270 = vmatpush3.msra.mxu1 %v113_v20 }
  0x21   :  { %271 = vmatprep.subr.mxu1 %v301_v4 }
  0x22   :  { %272 = vmatpush3.msra.mxu1 %v112_v21 }
  0xc6   :  { %v96_v23 = vpop.f32.mrf.mxu0 }
  0xc7   :  { %v108_v24 = vadd.f32 %v222_v22, %v96_v23 }
  0xc8   :  { %v98_v27 = vpop.f32.mrf.mxu0 }
  0xc9   :  { %v109_v25 = vmul.f32 0.25, %v108_v24 }
  0xcb   :  { %v110_v26 = vmax.f32 %v108_v24, %v109_v25 }
  0xcd   :  { %v111_v28 = vadd.f32 %v110_v26, %v98_v27 }
  0xcf   :  { %274 = vmatmul.mubr.f32.vlgmr.msra.gmra.mxu1 %v111_v28 }
 0x18f   :  { %v201_v30 = vpop.f32.mrf.mxu1 }
 0x190   :  { %v202_v31 = vadd.f32 %v223_v29, %v201_v30 }
 0x191   :  { %v275_v32 = vpop.f32.mrf.mxu1 }
 0x192   :  { %206 = vst.msk [vmem:[#allocation2] sm:$0xff] %vm205_vm2, %v202_v31 }
 0x193   :  { %290 = shalt.err (!%p287_p4)
}
 0x194   :  { %216 = dma.vmem_to_hbm [thread:$0]  %s214_s3, 128, %s411_s5, [#allocation3]  }
 0x195   :  { %299 = dma.done.wait [#allocation3], 128  }
 0x196   :  { %300 = vsyncadd [#allocation3], 4294967168 }
 0x197   :  { %220 = vsyncpa [#allocation3], 1 }

// kernel: tpu_custom_call.1
= control target key start
LH: loop header
LB: loop body
LE: loop exit
PB: predicated region body
PF: predicated region fallthrough
CT: control target
= control target key end

     0   :  { %v301_v4 = vmov 0.0   ;;  %vm26_vm0 = vcmask 130048   ;;  %s406_s0 = inlined_call_operand.vmem [shape: f32[8,16], index: 0, kind: input, shape index: {}]   ;;  %s407_s1 = inlined_call_operand.vmem [shape: f32[16,256], index: 1, kind: input, shape index: {}]   ;;  %s408_s2 = inlined_call_operand.vmem [shape: f32[1,128], index: 2, kind: input, shape index: {}]   ;;  %s409_s3 = inlined_call_operand.vmem [shape: f32[128,32], index: 3, kind: input, shape index: {}]   ;;  %s410_s4 = inlined_call_operand.vmem [shape: f32[1,32], index: 4, kind: input, shape index: {}]   ;;  %s411_s5 = inlined_call_operand.hbm [shape: f32[8,32], index: 5, kind: output, shape index: {}]  }
   0x1   :  { %v25_v0 = vld [vmem:[%s407_s1 + $0x18] sm:$0xff]  ;;  %v24_v1 = vld [vmem:[%s407_s1 + $0x10] sm:$0xff]  ;;  %v23_v2 = vld [vmem:[%s407_s1 + $0x8] sm:$0xff]  ;;  %94 = vmatprep.mubr.f32.mxu0 %v301_v4  ;;  %241 = vmatprep.subr.mxu1 %v301_v4 }
   0x2   :  { %58 = vmatprep.subr.mxu0 %v25_v0  ;;  %v22_v3 = vld [vmem:[%s407_s1] sm:$0xff]  ;;  %v127_v5 = vld [vmem:[%s409_s3 + $0x78] sm:$0xff]  ;;  %v126_v7 = vld [vmem:[%s409_s3 + $0x70] sm:$0xff] }
   0x3   :  { %59 = vmatpush1.msra.mxu0 %v24_v1  ;;  %v21_v6 = vld [vmem:[%s406_s0] sm:$0xff]  ;;  %242 = vmatpush3.msra.mxu1 %v127_v5  ;;  %v125_v8 = vld [vmem:[%s409_s3 + $0x68] sm:$0xff] }
   0x4   :  { %60 = vmatprep.subr.mxu0 %v23_v2  ;;  %243 = vmatprep.subr.mxu1 %v301_v4 }
   0x5   :  { %61 = vmatpush1.msra.mxu0 %v22_v3  ;;  %244 = vmatpush3.msra.mxu1 %v126_v7 }
   0x6   :  { %221 = vmatmul.mubr.msk.f32.vlgmr.msra.gmra.mxu0 %vm26_vm0, %v21_v6 }
   0x7   :  { %10 = vsyncpa [#allocation3], 0  ;;  %245 = vmatprep.subr.mxu1 %v301_v4  ;;  %v124_v9 = vld [vmem:[%s409_s3 + $0x60] sm:$0xff]  ;;  %v123_v10 = vld [vmem:[%s409_s3 + $0x58] sm:$0xff]  ;;  %vm302_vm1 = vmmov 0   ;;  %s303_s10 = smov [#allocation2]  }
   0x8   :  { %246 = vmatpush3.msra.mxu1 %v125_v8  ;;  %v122_v11 = vld [vmem:[%s409_s3 + $0x50] sm:$0xff]  ;;  %v121_v12 = vld [vmem:[%s409_s3 + $0x48] sm:$0xff]  ;;  %v120_v13 = vld [vmem:[%s409_s3 + $0x40] sm:$0xff]  ;;  %273 = vmatprep.mubr.msk.f32.mxu1 %vm302_vm1, %v301_v4  ;;  %vm205_vm2 = vcmask 261120  }
   0x9   :  { %247 = vmatprep.subr.mxu1 %v301_v4  ;;  %v119_v14 = vld [vmem:[%s409_s3 + $0x38] sm:$0xff]  ;;  %v118_v15 = vld [vmem:[%s409_s3 + $0x30] sm:$0xff]  ;;  %v117_v16 = vld [vmem:[%s409_s3 + $0x28] sm:$0xff] }
   0xa   :  { %248 = vmatpush3.msra.mxu1 %v124_v9  ;;  %v116_v17 = vld [vmem:[%s409_s3 + $0x20] sm:$0xff]  ;;  %v115_v18 = vld [vmem:[%s409_s3 + $0x18] sm:$0xff]  ;;  %v114_v19 = vld [vmem:[%s409_s3 + $0x10] sm:$0xff] }
   0xb   :  { %249 = vmatprep.subr.mxu1 %v301_v4  ;;  %v113_v20 = vld [vmem:[%s409_s3 + $0x8] sm:$0xff]  ;;  %v112_v21 = vld [vmem:[%s409_s3] sm:$0xff]  ;;  %s213_s3 = sshll.u32 %s303_s10, 4  ;;  %s214_s3 = int_to_ptr.vmem [resolvable:$true] %s213_s3 }
   0xc   :  { %250 = vmatpush3.msra.mxu1 %v123_v10  ;;  %v222_v22 = vld [vmem:[%s408_s2] ss:$0 sm:$0xff]  ;;  %s279_s2 = scalar_lea.vmem %s214_s3, 128  ;;  %p284_p1 = scmp.lt.s32.totalorder %s214_s3, %s214_s3 }
   0xd   :  { %251 = vmatprep.subr.mxu1 %v301_v4  ;;  %v223_v29 = vld [vmem:[%s410_s4] ss:$0 sm:$0xff]  ;;  %p280_p0 = scmp.ne.s32.totalorder %s214_s3, %s279_s2  ;;  %p285_p2 = scmp.lt.s32.totalorder %s279_s2, %s279_s2 }
   0xe   :  { %252 = vmatpush3.msra.mxu1 %v122_v11 }
   0xf   :  { %253 = vmatprep.subr.mxu1 %v301_v4  ;;  %p286_p3 = por %p285_p2, %p284_p1 }
  0x10   :  { %254 = vmatpush3.msra.mxu1 %v121_v12 }
  0x11   :  { %255 = vmatprep.subr.mxu1 %v301_v4  ;;  %p287_p4 = pnand %p286_p3, %p280_p0 }
  0x12   :  { %256 = vmatpush3.msra.mxu1 %v120_v13 }
  0x13   :  { %257 = vmatprep.subr.mxu1 %v301_v4 }
  0x14   :  { %258 = vmatpush3.msra.mxu1 %v119_v14 }
  0x15   :  { %259 = vmatprep.subr.mxu1 %v301_v4 }
  0x16   :  { %260 = vmatpush3.msra.mxu1 %v118_v15 }
  0x17   :  { %261 = vmatprep.subr.mxu1 %v301_v4 }
  0x18   :  { %262 = vmatpush3.msra.mxu1 %v117_v16 }
  0x19   :  { %263 = vmatprep.subr.mxu1 %v301_v4 }
  0x1a   :  { %264 = vmatpush3.msra.mxu1 %v116_v17 }
  0x1b   :  { %265 = vmatprep.subr.mxu1 %v301_v4 }
  0x1c   :  { %266 = vmatpush3.msra.mxu1 %v115_v18 }
  0x1d   :  { %267 = vmatprep.subr.mxu1 %v301_v4 }
  0x1e   :  { %268 = vmatpush3.msra.mxu1 %v114_v19 }
  0x1f   :  { %269 = vmatprep.subr.mxu1 %v301_v4 }
  0x20   :  { %270 = vmatpush3.msra.mxu1 %v113_v20 }
  0x21   :  { %271 = vmatprep.subr.mxu1 %v301_v4 }
  0x22   :  { %272 = vmatpush3.msra.mxu1 %v112_v21 }
  0xc6   :  { %v96_v23 = vpop.f32.mrf.mxu0 }
  0xc7   :  { %v108_v24 = vadd.f32 %v222_v22, %v96_v23 }
  0xc8   :  { %v98_v27 = vpop.f32.mrf.mxu0 }
  0xc9   :  { %v109_v25 = vmul.f32 0.25, %v108_v24 }
  0xcb   :  { %v110_v26 = vmax.f32 %v108_v24, %v109_v25 }
  0xcd   :  { %v111_v28 = vadd.f32 %v110_v26, %v98_v27 }
  0xcf   :  { %274 = vmatmul.mubr.f32.vlgmr.msra.gmra.mxu1 %v111_v28 }
 0x18f   :  { %v201_v30 = vpop.f32.mrf.mxu1 }
 0x190   :  { %v202_v31 = vadd.f32 %v223_v29, %v201_v30 }
 0x191   :  { %v275_v32 = vpop.f32.mrf.mxu1 }
 0x192   :  { %206 = vst.msk [vmem:[#allocation2] sm:$0xff] %vm205_vm2, %v202_v31 }
 0x193   :  { %290 = shalt.err (!%p287_p4)
}
 0x194   :  { %216 = dma.vmem_to_hbm [thread:$0]  %s214_s3, 128, %s411_s5, [#allocation3]  }
 0x195   :  { %299 = dma.done.wait [#allocation3], 128  }
 0x196   :  { %300 = vsyncadd [#allocation3], 4294967168 }
 0x197   :  { %220 = vsyncpa [#allocation3], 1 }

</bundles_post_ra>
